<compile_context>
chip_gen: v5e
topology: v5e:2x2
jax: 0.10.0
libtpu: 0.0.40
codegen_flags: <defaults>
</compile_context>

<pallas_src>
import jax
import jax.numpy as jnp
from jax.experimental import pallas as pl
from jax.experimental.pallas import tpu as pltpu


def _round_up(x, m):
    return ((x + m - 1) // m) * m


# ----------------------------- Pallas kernels -----------------------------

def _make_matmul_bias_kernel(n_act):
    """(sum of n_act bf16 activation tiles) @ W_bf16 + b_f32, f32 accumulate."""
    def kernel(*refs):
        act_refs = refs[:n_act]
        w_ref, b_ref, o_ref = refs[n_act], refs[n_act + 1], refs[n_act + 2]
        x = act_refs[0][...]
        for r in act_refs[1:]:
            x = x + r[...]                      # bf16 add (inputs are stored bf16)
        y = jnp.dot(x, w_ref[...], preferred_element_type=jnp.float32) + b_ref[...]
        o_ref[...] = y.astype(o_ref.dtype)
    return kernel


def conv1x1(xs, w, b, *, tile_rows=2048, out_dtype=jnp.bfloat16):
    """1x1 conv == per-pixel matmul, fused over a sum of inputs.

    xs: a (B,H,W,Cin) array or a list of them (summed before the matmul).
    w : (Cin, Cout), b: (Cout,).  Activations/weights are cast to bf16 once in the
    wrapper (halves activation DMA, removes per-tile VPU casts); accumulation and
    bias add are f32.  Tiled over the flattened pixel axis N=B*H*W with row tiles
    of `tile_rows` (multiple of 16 for bf16 sublane packing); weight/bias resident.
    """
    if not isinstance(xs, (list, tuple)):
        xs = [xs]
    B, H, W, Cin = xs[0].shape
    Cout = w.shape[1]
    N = B * H * W
    TN = _round_up(min(tile_rows, N), 16)
    N_pad = _round_up(N, TN)

    flats = []
    for x in xs:
        xf = x.astype(jnp.bfloat16).reshape(N, Cin)
        if N_pad != N:
            xf = jnp.pad(xf, ((0, N_pad - N), (0, 0)))
        flats.append(xf)
    w_bf = w.astype(jnp.bfloat16)
    b_f32 = b.reshape(1, Cout).astype(jnp.float32)

    act_spec = pl.BlockSpec((TN, Cin), lambda i: (i, 0))
    # TODO(synk): add a K-tiling grid axis + f32 accumulator scratch for very wide
    # Cin at production shapes (keeps per-step VMEM bounded on v7x's 64 MiB).
    out = pl.pallas_call(
        _make_matmul_bias_kernel(len(flats)),
        out_shape=jax.ShapeDtypeStruct((N_pad, Cout), out_dtype),
        grid=(N_pad // TN,),
        in_specs=[act_spec] * len(flats) + [
            pl.BlockSpec((Cin, Cout), lambda i: (0, 0)),
            pl.BlockSpec((1, Cout), lambda i: (0, 0))],
        out_specs=pl.BlockSpec((TN, Cout), lambda i: (i, 0)),
        compiler_params=pltpu.CompilerParams(
            dimension_semantics=("parallel",),
            vmem_limit_bytes=32 * 1024 * 1024),
    )(*flats, w_bf, b_f32)
    return out[:N].reshape(B, H, W, Cout)


def dwconv3x3(x_nhwc, w, b, *, out_dtype=jnp.bfloat16):
    """Depthwise 3x3 conv, stride 1, SAME zero padding. w:(3,3,C), b:(C,).

    No jnp.pad HBM round trip: padding handled in-kernel.  The kw taps are built
    with pltpu.roll along the sublane (W) axis + a boundary mask (XLU slot, no
    shifted VMEM copies); the kh taps are static leading-axis slice-updates into an
    f32 VMEM accumulator.  Input is loaded as bf16, math/accumulation in f32.
    """
    B, H, W, C = x_nhwc.shape
    x_bf = x_nhwc.astype(jnp.bfloat16)

    def kernel(x_ref, w_ref, b_ref, o_ref, acc_ref):
        x = x_ref[...].astype(jnp.float32)                      # (H, W, C)
        col = jax.lax.broadcasted_iota(jnp.int32, (H, W, C), 1)
        acc_ref[...] = jnp.zeros_like(acc_ref)
        for kw in range(3):
            dw = kw - 1
            if dw == 0:
                xs = x
            else:
                # out[:, w] uses x[:, w + dw]; wrapped column is masked to zero.
                xs = pltpu.roll(x, shift=(-dw) % W, axis=1)
                bad = 0 if dw == -1 else W - 1
                xs = jnp.where(col == bad, 0.0, xs)
            # kh = 1 (dh = 0): all rows.
            acc_ref[...] = acc_ref[...] + xs * w_ref[1, kw, :]
            # kh = 0 (dh = -1): output rows 1..H-1 read input rows 0..H-2.
            acc_ref[1:, :, :] = acc_ref[1:, :, :] + xs[:H - 1] * w_ref[0, kw, :]
            # kh = 2 (dh = +1): output rows 0..H-2 read input rows 1..H-1.
            acc_ref[:H - 1, :, :] = acc_ref[:H - 1, :, :] + xs[1:] * w_ref[2, kw, :]
        o_ref[...] = (acc_ref[...] + b_ref[...]).astype(o_ref.dtype)

    # TODO(synk): tile over H-chunks with a 1-row halo (grid=(B, H//TH)) for
    # production H/W/C on v7x (64 MiB VMEM, 2 TCs); whole-image-per-batch blocks
    # are fine at these shapes.
    return pl.pallas_call(
        kernel,
        out_shape=jax.ShapeDtypeStruct((B, H, W, C), out_dtype),
        grid=(B,),
        in_specs=[pl.BlockSpec((None, H, W, C), lambda i: (i, 0, 0, 0)),
                  pl.BlockSpec((3, 3, C), lambda i: (0, 0, 0)),
                  pl.BlockSpec((1, 1, C), lambda i: (0, 0, 0))],
        out_specs=pl.BlockSpec((None, H, W, C), lambda i: (i, 0, 0, 0)),
        scratch_shapes=[pltpu.VMEM((H, W, C), jnp.float32)],
        compiler_params=pltpu.CompilerParams(
            dimension_semantics=("parallel",),
            vmem_limit_bytes=32 * 1024 * 1024),
    )(x_bf, w, b.reshape(1, 1, C))


def regional_routing_attention(q_reg, kv_reg, idx_flat, topk, *, kv_buffers=3):
    """Regional routing attention (BiFormer style), heads folded into each step.

    q_reg : (B, R, Hh, T, Dh)    bf16 (softmax scale already folded into q).
    kv_reg: (B, R, Hh, T, 2*Dh)  bf16, K stacked with V along the lane dim so each
            data-dependent top-k step issues a single gather DMA.
    idx_flat: (B*R*topk,) int32 region graph (top-k KV regions per query region,
            shared across heads of a batch), consumed by the kv index_map.
    Online softmax accumulated over the top-k grid axis; gathered KV spec uses
    pipeline_mode=pl.Buffered(kv_buffers) to hide the gather DMA latency.
    """
    B, R, Hh, T, Dh = q_reg.shape

    def kernel(idx_ref, q_ref, kv_ref, o_ref, m_sc, l_sc, acc_sc):
        del idx_ref  # only used inside the index_maps
        t = pl.program_id(2)

        @pl.when(t == 0)
        def _():
            m_sc[...] = jnp.full_like(m_sc, -jnp.inf)
            l_sc[...] = jnp.zeros_like(l_sc)
            acc_sc[...] = jnp.zeros_like(acc_sc)

        kv = kv_ref[...]                   # (Hh, T, 2*Dh) bf16, one DMA per step
        k = kv[:, :, :Dh]
        v = kv[:, :, Dh:]
        # (Hh, T, Dh) x (Hh, T, Dh) -> (Hh, T, T), bf16 operands, f32 accumulate.
        s = jnp.einsum('htd,hsd->hts', q_ref[...], k,
                       preferred_element_type=jnp.float32)
        m_new = jnp.maximum(m_sc[...], s.max(axis=-1, keepdims=True))
        alpha = jnp.exp(m_sc[...] - m_new)
        p = jnp.exp(s - m_new)
        l_sc[...] = alpha * l_sc[...] + p.sum(axis=-1, keepdims=True)
        acc_sc[...] = alpha * acc_sc[...] + jnp.einsum(
            'hts,hsd->htd', p.astype(jnp.bfloat16), v,
            preferred_element_type=jnp.float32)
        m_sc[...] = m_new

        @pl.when(t == pl.num_programs(2) - 1)
        def _():
            # TODO(synk): at production Dh (>=64) emit a lane-dense (T, Hh*Dh)
            # output block via an in-kernel transpose to avoid masked stores.
            o_ref[...] = (acc_sc[...] *
                          pl.reciprocal(l_sc[...], approx=True)).astype(o_ref.dtype)

    # TODO(synk): at production T/Dh, fold the topk axis into the kernel
    # (lax.fori_loop + manual double-buffered gather DMA driven by the SMEM idx)
    # to cut grid-step overhead by topk x.
    grid_spec = pltpu.PrefetchScalarGridSpec(
        num_scalar_prefetch=1,
        grid=(B, R, topk),
        in_specs=[
            pl.BlockSpec((None, None, Hh, T, Dh),
                         lambda b, r, t, idx: (b, r, 0, 0, 0)),
            pl.BlockSpec((None, None, Hh, T, 2 * Dh),
                         lambda b, r, t, idx: (b, idx[(b * R + r) * topk + t],
                                               0, 0, 0),
                         pipeline_mode=pl.Buffered(kv_buffers)),
        ],
        out_specs=pl.BlockSpec((None, None, Hh, T, Dh),
                               lambda b, r, t, idx: (b, r, 0, 0, 0)),
        scratch_shapes=[pltpu.VMEM((Hh, T, 1), jnp.float32),
                        pltpu.VMEM((Hh, T, 1), jnp.float32),
                        pltpu.VMEM((Hh, T, Dh), jnp.float32)],
    )
    return pl.pallas_call(
        kernel,
        out_shape=jax.ShapeDtypeStruct((B, R, Hh, T, Dh), jnp.bfloat16),
        grid_spec=grid_spec,
        compiler_params=pltpu.CompilerParams(
            dimension_semantics=("parallel", "parallel", "arbitrary")),
    )(idx_flat, q_reg, kv_reg)


# ----------------------------- module forward -----------------------------

def init_params(key, dim, side_dwconv=3):
    ks = jax.random.split(key, 8)
    return {
        'wq': 0.2 * jax.random.normal(ks[0], (dim, dim), jnp.float32),
        'bq': 0.1 * jax.random.normal(ks[1], (dim,), jnp.float32),
        'wkv': 0.2 * jax.random.normal(ks[2], (dim, 2 * dim), jnp.float32),
        'bkv': 0.1 * jax.random.normal(ks[3], (2 * dim,), jnp.float32),
        'wo': 0.2 * jax.random.normal(ks[4], (dim, dim), jnp.float32),
        'bo': 0.1 * jax.random.normal(ks[5], (dim,), jnp.float32),
        'w_lepe': 0.2 * jax.random.normal(ks[6], (side_dwconv, side_dwconv, dim),
                                          jnp.float32),
        'b_lepe': 0.1 * jax.random.normal(ks[7], (dim,), jnp.float32),
    }


def motion_aware_block(x_nchw, params, *, seqlen, num_heads, n_win, topk,
                       conv_tile_rows=2048):
    BS, C, H, W = x_nchw.shape
    B = BS // seqlen
    Dh = C // num_heads
    scale = C ** (-0.5)           # module uses dim**-0.5 (not head_dim)
    rh, rw = H // n_win, W // n_win
    R, T = n_win * n_win, rh * rw

    xs = x_nchw.reshape(B, seqlen, C, H, W)
    frame_now = xs[:, -1]
    t_idx = jnp.arange(seqlen - 1, dtype=jnp.float32)
    weights = jnp.exp(jnp.float32(2 - seqlen) - t_idx)   # == e**(-seqlen - t + 2)
    frame_his = jnp.sum(xs[:, :-1] * weights[None, :, None, None, None], axis=1)

    fn = jnp.transpose(frame_now, (0, 2, 3, 1))   # NHWC
    fh = jnp.transpose(frame_his, (0, 2, 3, 1))

    # Softmax scale folded into the q projection: free, and the top-k routing is
    # invariant to a uniform positive scaling of q.  q/kv are stored bf16.
    q = conv1x1(fn, params['wq'] * scale, params['bq'] * scale,
                tile_rows=conv_tile_rows, out_dtype=jnp.bfloat16)
    kv = conv1x1(fh, params['wkv'], params['bkv'],
                 tile_rows=conv_tile_rows, out_dtype=jnp.bfloat16)
    # TODO(synk): when C is a multiple of 128, fold this channel split into the
    # dwconv / pooling BlockSpecs instead of materializing the slice in HBM.
    v = kv[..., C:]                                       # bf16, feeds lepe

    # Regional average pooling + routing scores + top-k stay in plain JAX
    # (H, W divisible by n_win -> plain mean; ceil_mode / count_include_pad no-ops).
    # The (R, C)@(C, R) scores are tiny and feed jax.lax.top_k, so XLA fusion wins.
    q_f32 = q.astype(jnp.float32)
    k_f32 = kv[..., :C].astype(jnp.float32)
    q_r = q_f32.reshape(B, n_win, rh, n_win, rw, C).mean(axis=(2, 4)).reshape(B, R, C)
    k_r = k_f32.reshape(B, n_win, rh, n_win, rw, C).mean(axis=(2, 4)).reshape(B, R, C)
    a_r = jnp.einsum('brc,bsc->brs', q_r, k_r)             # (B, R, R)
    _, idx = jax.lax.top_k(a_r, topk)                      # (B, R, topk)

    # Region blocking (pure layout, stays in XLA).  K/V stacked along the lane dim
    # -> a single gathered array for the attention kernel.
    # TODO(synk): express region blocking directly in the attention BlockSpecs over
    # (win_i, win_j) to avoid these HBM round trips at production shapes.
    q_reg = q.reshape(B, n_win, rh, n_win, rw, num_heads, Dh)
    q_reg = jnp.transpose(q_reg, (0, 1, 3, 5, 2, 4, 6)).reshape(B, R, num_heads, T, Dh)
    kv_reg = kv.reshape(B, n_win, rh, n_win, rw, 2, num_heads, Dh)
    kv_reg = jnp.transpose(kv_reg, (0, 1, 3, 6, 2, 4, 5, 7)).reshape(
        B, R, num_heads, T, 2 * Dh)
    idx_flat = idx.reshape(-1).astype(jnp.int32)            # shared across heads

    o_reg = regional_routing_attention(q_reg, kv_reg, idx_flat, topk)

    o = o_reg.reshape(B, n_win, n_win, num_heads, rh, rw, Dh)
    o = jnp.transpose(o, (0, 1, 4, 2, 5, 3, 6)).reshape(B, H, W, C)   # bf16

    lepe = dwconv3x3(v, params['w_lepe'], params['b_lepe'])           # bf16
    # `o + lepe` is fused into the output-projection kernel (no extra HBM pass).
    out = conv1x1([o, lepe], params['wo'], params['bo'],
                  tile_rows=conv_tile_rows, out_dtype=jnp.float32)
    return jnp.transpose(out, (0, 3, 1, 2))       # back to NCHW


# --------------------------- pure-JAX reference ---------------------------

def reference_forward(x_nchw, params, *, seqlen, num_heads, n_win, topk):
    """Mirrors the kernels' bf16 storage / bf16-operand f32-accumulate matmuls so
    the comparison checks indexing, gather & layout rather than accumulated
    quantization error."""
    BS, C, H, W = x_nchw.shape
    B = BS // seqlen
    Dh = C // num_heads
    scale = C ** (-0.5)
    rh, rw = H // n_win, W // n_win
    R, T = n_win * n_win, rh * rw

    xs = x_nchw.reshape(B, seqlen, C, H, W)
    frame_now = xs[:, -1]
    t_idx = jnp.arange(seqlen - 1, dtype=jnp.float32)
    weights = jnp.exp(jnp.float32(2 - seqlen) - t_idx)
    frame_his = jnp.sum(xs[:, :-1] * weights[None, :, None, None, None], axis=1)

    fn = jnp.transpose(frame_now, (0, 2, 3, 1))
    fh = jnp.transpose(frame_his, (0, 2, 3, 1))

    def proj(x, w, b):
        return jnp.dot(x.astype(jnp.bfloat16), w.astype(jnp.bfloat16),
                       preferred_element_type=jnp.float32) + b

    q = proj(fn, params['wq'] * scale, params['bq'] * scale).astype(jnp.bfloat16)
    kv = proj(fh, params['wkv'], params['bkv']).astype(jnp.bfloat16)
    k, v = kv[..., :C], kv[..., C:]
    qf, kf, vf = (z.astype(jnp.float32) for z in (q, k, v))

    q_r = qf.reshape(B, n_win, rh, n_win, rw, C).mean(axis=(2, 4)).reshape(B, R, C)
    k_r = kf.reshape(B, n_win, rh, n_win, rw, C).mean(axis=(2, 4)).reshape(B, R, C)
    a_r = jnp.einsum('brc,bsc->brs', q_r, k_r)
    _, idx = jax.lax.top_k(a_r, topk)

    def to_regions(z):
        z = z.reshape(B, n_win, rh, n_win, rw, num_heads, Dh)
        z = jnp.transpose(z, (0, 5, 1, 3, 2, 4, 6))
        return z.reshape(B, num_heads, R, T, Dh)

    qg, kg, vg = to_regions(qf), to_regions(kf), to_regions(vf)
    idx_bh = jnp.broadcast_to(idx[:, None], (B, num_heads, R, topk))
    bi = jnp.arange(B)[:, None, None, None]
    hi = jnp.arange(num_heads)[None, :, None, None]
    kgat = kg[bi, hi, idx_bh].reshape(B, num_heads, R, topk * T, Dh)
    vgat = vg[bi, hi, idx_bh].reshape(B, num_heads, R, topk * T, Dh)
    # q already carries the softmax scale.
    attn = jax.nn.softmax(jnp.einsum('bhrtd,bhrkd->bhrtk', qg, kgat), axis=-1)
    og = jnp.einsum('bhrtk,bhrkd->bhrtd', attn, vgat)
    og = og.reshape(B, num_heads, n_win, n_win, rh, rw, Dh)
    og = jnp.transpose(og, (0, 2, 4, 3, 5, 1, 6)).reshape(B, H, W, C)
    og = og.astype(jnp.bfloat16)                 # attention output stored bf16

    vp = jnp.pad(vf, ((0, 0), (1, 1), (1, 1), (0, 0)))
    lepe = params['b_lepe'] + sum(
        vp[:, kh:kh + H, kw:kw + W, :] * params['w_lepe'][kh, kw]
        for kh in range(3) for kw in range(3))
    lepe = lepe.astype(jnp.bfloat16)             # lepe stored bf16

    out = proj(og + lepe, params['wo'], params['bo'])
    return jnp.transpose(out, (0, 3, 1, 2))


# ----------------------------------- main ----------------------------------

if __name__ == "__main__":
    seqlen, B, dim, num_heads, n_win, topk = 2, 2, 8, 2, 2, 2
    H = W = 16   # divisible by n_win -> region_size = (8, 8)

    key = jax.random.PRNGKey(0)
    kx, kp = jax.random.split(key)
    x = jax.random.normal(kx, (B * seqlen, dim, H, W), jnp.float32)
    params = init_params(kp, dim)

    # conv_tile_rows=128 exercises the multi-step tiled conv1x1 path (N = 512).
    out = motion_aware_block(x, params, seqlen=seqlen, num_heads=num_heads,
                             n_win=n_win, topk=topk, conv_tile_rows=128)
    out = jax.block_until_ready(out)
    assert out.shape == (B, dim, H, W)

    ref = reference_forward(x, params, seqlen=seqlen, num_heads=num_heads,
                            n_win=n_win, topk=topk)
    # bf16 storage/operands + approx reciprocal => compare at ~2e-2 tolerance.
    if not jnp.allclose(out, ref, rtol=2e-2, atol=2e-2):
        raise AssertionError(
            f"mismatch vs reference, max abs diff = {jnp.max(jnp.abs(out - ref))}")

    print("KERNEL_OK")
</pallas_src>

<mosaic_0001>
module attributes {stable_mosaic.version = 11 : i64} {
  func.func @kernel(%arg0: i32, %arg1: memref<128x8xbf16, #tpu.memory_space<vmem>>, %arg2: memref<8x8xbf16, #tpu.memory_space<vmem>>, %arg3: memref<1x8xf32, #tpu.memory_space<vmem>>, %arg4: memref<128x8xbf16, #tpu.memory_space<vmem>>) attributes {dimension_semantics = [#tpu.dimension_semantics<parallel>], iteration_bounds = array<i64: 4>, scalar_prefetch = 0 : i64, scratch_operands = 0 : i64, tpu.core_type = #tpu.core_type<tc>, window_params = [{transform_indices = @transform_0, window_bounds = array<i64: 128, 8>}, {pipeline_mode = #tpu.pipeline_mode<synchronous>, transform_indices = @transform_1, window_bounds = array<i64: 8, 8>}, {pipeline_mode = #tpu.pipeline_mode<synchronous>, transform_indices = @transform_2, window_bounds = array<i64: 1, 8>}, {transform_indices = @transform_3, window_bounds = array<i64: 128, 8>}]} {
    %c0 = arith.constant 0 : index
    %c0_0 = arith.constant 0 : index
    %0 = vector.load %arg1[%c0, %c0_0] : memref<128x8xbf16, #tpu.memory_space<vmem>>, vector<128x8xbf16>
    %c0_1 = arith.constant 0 : index
    %c0_2 = arith.constant 0 : index
    %1 = vector.load %arg2[%c0_1, %c0_2] : memref<8x8xbf16, #tpu.memory_space<vmem>>, vector<8x8xbf16>
    %cst = arith.constant dense<0.000000e+00> : vector<128x8xf32>
    %2 = tpu.matmul %0, %1, %cst {dimension_numbers = #tpu.dot_dimension_numbers<[1], [0], [0], [1], [0, 0, 1, 1], [], []>} : vector<128x8xbf16>, vector<8x8xbf16>, vector<128x8xf32> -> vector<128x8xf32>
    %c0_3 = arith.constant 0 : index
    %c0_4 = arith.constant 0 : index
    %3 = vector.load %arg3[%c0_3, %c0_4] : memref<1x8xf32, #tpu.memory_space<vmem>>, vector<1x8xf32>
    %4 = vector.broadcast %3 : vector<1x8xf32> to vector<128x8xf32>
    %5 = arith.addf %2, %4 : vector<128x8xf32>
    %6 = arith.truncf %5 : vector<128x8xf32> to vector<128x8xbf16>
    %c0_5 = arith.constant 0 : index
    %c0_6 = arith.constant 0 : index
    %7 = vector.load %arg4[%c0_5, %c0_6] : memref<128x8xbf16, #tpu.memory_space<vmem>>, vector<128x8xbf16>
    tpu.vector_store %arg4[%c0_5, %c0_6], %6 {strides = array<i32>} : memref<128x8xbf16, #tpu.memory_space<vmem>>, vector<128x8xbf16>,
    return
  }
  func.func @transform_0(%arg0: i32) -> (i32, i32) {
    %c0_i32 = arith.constant 0 : i32
    %c0_i32_0 = arith.constant 0 : i32
    return %arg0, %c0_i32 : i32, i32
  }
  func.func @transform_1(%arg0: i32) -> (i32, i32) {
    %c0_i32 = arith.constant 0 : i32
    %c0_i32_0 = arith.constant 0 : i32
    %c0_i32_1 = arith.constant 0 : i32
    return %c0_i32, %c0_i32_0 : i32, i32
  }
  func.func @transform_2(%arg0: i32) -> (i32, i32) {
    %c0_i32 = arith.constant 0 : i32
    %c0_i32_0 = arith.constant 0 : i32
    %c0_i32_1 = arith.constant 0 : i32
    return %c0_i32, %c0_i32_0 : i32, i32
  }
  func.func @transform_3(%arg0: i32) -> (i32, i32) {
    %c0_i32 = arith.constant 0 : i32
    %c0_i32_0 = arith.constant 0 : i32
    return %arg0, %c0_i32 : i32, i32
  }
}

</mosaic_0001>

<bundles_post_ra>
// kernel: tpu_custom_call.1
= control target key start
LH: loop header
LB: loop body
LE: loop exit
PB: predicated region body
PF: predicated region fallthrough
CT: control target
= control target key end

     0   :  { %s502_s12 = smov 0   ;;  %s567_s0 = inlined_call_operand.vmem [shape: bf16[512,8], index: 0, kind: input, shape index: {}]   ;;  %s568_s1 = inlined_call_operand.vmem [shape: bf16[8,8], index: 1, kind: input, shape index: {}]   ;;  %s569_s2 = inlined_call_operand.vmem [shape: f32[1,8], index: 2, kind: input, shape index: {}]   ;;  %s570_s3 = inlined_call_operand.vmem [shape: bf16[512,8], index: 3, kind: output, shape index: {}]  }
   0x1 LB: > { %s403_s13 = sadd.s32 4294967295, %s480_s12   ;;  %p407_p0 = scmp.ge.s32.totalorder %s480_s12, 1  ;;  %s480_s12 = sphi %s502_s12, %s13_s12  }
   0x2   : > { %p138_p1 = scmp.lt.s32.totalorder %s480_s12, 5 }
   0x4   : > { %p139_p2 = pnand %p407_p0, %p138_p1 }
   0x5   : > { %s408_s16 = sshll.u32 (!%p139_p2), %s403_s13, 4 }
   0x6   : > { %142 = sbr.rel (%p139_p2) target bundleno = 179 (0xb3), region = 32  ;;  %p163_p3 = scmp.lt.s32.totalorder (!%p139_p2), %s408_s16, 63 }
   0xb   : > { %v191_v0 = vld [vmem:[%s568_s1] sm:$0xf]  ;;  %vm261_vm0 = vcmask 1043456   ;;  %s572_s16 = smov (!%p163_p3, %s408_s16), 63  ;;  %vm236_vm1 = vcmask 64512   ;;  %vm330_vm2 = vcmask 60416  }
   0xc   : > { %v263_v1 = vsel %vm261_vm0, %v191_v0, 0  ;;  %s409_s17 = sshll.u32 %s572_s16, 2  ;;  %v473_v10 = vld [vmem:[%s569_s2] ss:$0 sm:$0xff] }
   0xd   : > { %272 = vmatpush.bf16.msra.mxu0 %v263_v1  ;;  %462 = vmatpush.bf16.msra.mxu1 %v263_v1  ;;  %s166_s20 = scalar_lea.vmem %s567_s0, %s409_s17  ;;  %s530_s25 = scalar_lea.vmem %s570_s3, %s409_s17 }
   0xe   : > { %463 = vmatpush.bf16.msra.mxu2 %v263_v1  ;;  %464 = vmatpush.bf16.msra.mxu3 %v263_v1  ;;  %v454_v2 = vld [vmem:[%s166_s20] sm:$0xff]  ;;  %v456_v3 = vld [vmem:[%s166_s20 + $0x10] sm:$0xff]  ;;  %v455_v6 = vld [vmem:[%s166_s20 + $0x8] sm:$0xff] }
   0xf   : > { %v458_v4 = vld [vmem:[%s166_s20 + $0x20] sm:$0xff]  ;;  %v460_v5 = vld [vmem:[%s166_s20 + $0x30] sm:$0xff]  ;;  %v457_v7 = vld [vmem:[%s166_s20 + $0x18] sm:$0xff] }
  0x10   : > { %444 = vmatmul.msk.bf16.vlgmr.msra.gmra.mxu0 %vm236_vm1, %v454_v2  ;;  %446 = vmatmul.msk.bf16.vlgmr.msra.gmra.mxu1 %vm236_vm1, %v456_v3  ;;  %v459_v8 = vld [vmem:[%s166_s20 + $0x28] sm:$0xff]  ;;  %v461_v9 = vld [vmem:[%s166_s20 + $0x38] sm:$0xff] }
  0x11   : > { %448 = vmatmul.msk.bf16.vlgmr.msra.gmra.mxu2 %vm236_vm1, %v458_v4  ;;  %450 = vmatmul.msk.bf16.vlgmr.msra.gmra.mxu3 %vm236_vm1, %v460_v5 }
  0x20   : > { %445 = vmatmul.msk.bf16.gmra.mxu0 %vm236_vm1, %v455_v6  ;;  %447 = vmatmul.msk.bf16.gmra.mxu1 %vm236_vm1, %v457_v7 }
  0x21   : > { %449 = vmatmul.msk.bf16.gmra.mxu2 %vm236_vm1, %v459_v8  ;;  %451 = vmatmul.msk.bf16.gmra.mxu3 %vm236_vm1, %v461_v9 }
  0x8d   : > { %v274_v11 = vpop.f32.mrf.mxu0  ;;  %v284_v12 = vpop.f32.mrf.mxu1 }
  0x8e   : > { %v275_v13 = vadd.f32 %v473_v10, %v274_v11  ;;  %v285_v14 = vadd.f32 %v473_v10, %v284_v12 }
  0x90   : > { %v314_v15 = vpack.c.bf16 %v275_v13, %v275_v13  ;;  %v318_v16 = vpack.c.bf16 %v285_v14, %v285_v14 }
  0x92   : > { %331 = vst.msk [vmem:[%s530_s25] sm:$0xf] %vm330_vm2, %v314_v15 }
  0x93   : > { %335 = vst.msk [vmem:[%s530_s25 + $0x10] sm:$0xf] %vm330_vm2, %v318_v16 }
  0x94   : > { %v294_v17 = vpop.f32.mrf.mxu2  ;;  %v304_v18 = vpop.f32.mrf.mxu3 }
  0x95   : > { %v295_v19 = vadd.f32 %v473_v10, %v294_v17  ;;  %v305_v20 = vadd.f32 %v473_v10, %v304_v18  ;;  %v276_v21 = vpop.f32.mrf.mxu0  ;;  %v286_v22 = vpop.f32.mrf.mxu1 }
  0x96   : > { %v277_v23 = vadd.f32 %v473_v10, %v276_v21  ;;  %v287_v24 = vadd.f32 %v473_v10, %v286_v22 }
  0x97   : > { %v322_v25 = vpack.c.bf16 %v295_v19, %v295_v19  ;;  %v326_v26 = vpack.c.bf16 %v305_v20, %v305_v20 }
  0x98   : > { %v315_v27 = vpack.c.bf16 %v277_v23, %v277_v23  ;;  %v319_v28 = vpack.c.bf16 %v287_v24, %v287_v24 }
  0x99   : > { %339 = vst.msk [vmem:[%s530_s25 + $0x20] sm:$0xf] %vm330_vm2, %v322_v25 }
  0x9a   : > { %343 = vst.msk [vmem:[%s530_s25 + $0x30] sm:$0xf] %vm330_vm2, %v326_v26 }
  0x9b   : > { %332 = vst.msk [vmem:[%s530_s25 + $0x4] sm:$0xf] %vm330_vm2, %v315_v27 }
  0x9c   : > { %336 = vst.msk [vmem:[%s530_s25 + $0x14] sm:$0xf] %vm330_vm2, %v319_v28  ;;  %v296_v29 = vpop.f32.mrf.mxu2  ;;  %v306_v30 = vpop.f32.mrf.mxu3 }
  0x9d   : > { %v297_v31 = vadd.f32 %v473_v10, %v296_v29  ;;  %v307_v32 = vadd.f32 %v473_v10, %v306_v30  ;;  %v279_v33 = vpop.f32.mrf.mxu0  ;;  %v289_v34 = vpop.f32.mrf.mxu1 }
  0x9e   : > { %v280_v35 = vadd.f32 %v473_v10, %v279_v33  ;;  %v290_v36 = vadd.f32 %v473_v10, %v289_v34 }
  0x9f   : > { %v323_v37 = vpack.c.bf16 %v297_v31, %v297_v31  ;;  %v327_v38 = vpack.c.bf16 %v307_v32, %v307_v32 }
  0xa0   : > { %v316_v39 = vpack.c.bf16 %v280_v35, %v280_v35  ;;  %v320_v40 = vpack.c.bf16 %v290_v36, %v290_v36 }
  0xa1   : > { %340 = vst.msk [vmem:[%s530_s25 + $0x24] sm:$0xf] %vm330_vm2, %v323_v37 }
  0xa2   : > { %344 = vst.msk [vmem:[%s530_s25 + $0x34] sm:$0xf] %vm330_vm2, %v327_v38 }
  0xa3   : > { %333 = vst.msk [vmem:[%s530_s25 + $0x8] sm:$0xf] %vm330_vm2, %v316_v39 }
  0xa4   : > { %337 = vst.msk [vmem:[%s530_s25 + $0x18] sm:$0xf] %vm330_vm2, %v320_v40  ;;  %v299_v41 = vpop.f32.mrf.mxu2  ;;  %v309_v42 = vpop.f32.mrf.mxu3 }
  0xa5   : > { %v300_v43 = vadd.f32 %v473_v10, %v299_v41  ;;  %v310_v44 = vadd.f32 %v473_v10, %v309_v42  ;;  %v281_v45 = vpop.f32.mrf.mxu0  ;;  %v291_v46 = vpop.f32.mrf.mxu1 }
  0xa6   : > { %v282_v47 = vadd.f32 %v473_v10, %v281_v45  ;;  %v292_v48 = vadd.f32 %v473_v10, %v291_v46 }
  0xa7   : > { %v324_v49 = vpack.c.bf16 %v300_v43, %v300_v43  ;;  %v328_v50 = vpack.c.bf16 %v310_v44, %v310_v44 }
  0xa8   : > { %v317_v51 = vpack.c.bf16 %v282_v47, %v282_v47  ;;  %v321_v52 = vpack.c.bf16 %v292_v48, %v292_v48 }
  0xa9   : > { %341 = vst.msk [vmem:[%s530_s25 + $0x28] sm:$0xf] %vm330_vm2, %v324_v49 }
  0xaa   : > { %345 = vst.msk [vmem:[%s530_s25 + $0x38] sm:$0xf] %vm330_vm2, %v328_v50 }
  0xab   : > { %334 = vst.msk [vmem:[%s530_s25 + $0xc] sm:$0xf] %vm330_vm2, %v317_v51 }
  0xac   : > { %338 = vst.msk [vmem:[%s530_s25 + $0x1c] sm:$0xf] %vm330_vm2, %v321_v52  ;;  %v301_v53 = vpop.f32.mrf.mxu2  ;;  %v311_v54 = vpop.f32.mrf.mxu3 }
  0xad   : > { %v302_v55 = vadd.f32 %v473_v10, %v301_v53  ;;  %v312_v56 = vadd.f32 %v473_v10, %v311_v54 }
  0xaf   : > { %v325_v57 = vpack.c.bf16 %v302_v55, %v302_v55  ;;  %v329_v58 = vpack.c.bf16 %v312_v56, %v312_v56 }
  0xb1   : > { %342 = vst.msk [vmem:[%s530_s25 + $0x2c] sm:$0xf] %vm330_vm2, %v325_v57 }
  0xb2   : > { %346 = vst.msk [vmem:[%s530_s25 + $0x3c] sm:$0xf] %vm330_vm2, %v329_v58 }
  0xb3 PF: > { %s13_s12 = sadd.s32 1, %s480_s12  }
  0xb4   : > { %p10_p4 = scmp.ge.s32.totalorder %s13_s12, 6  }
  0xb6   :  { %12 = sbr.rel (!%p10_p4) target bundleno = 1 (0x1), region = 62 }

</bundles_post_ra>
